<compile_context>
chip_gen: v5e
topology: v5e:2x2
jax: 0.10.0
libtpu: 0.0.40
codegen_flags: <defaults>
</compile_context>

<pallas_src>
import functools

import jax
import jax.numpy as jnp
from jax.experimental import pallas as pl
from jax.experimental.pallas import tpu as pltpu

# ---------------- configuration (small, consistent with the module) ----------
B = 2             # batch
C = 8             # channels
A = 16            # attention_channels
L = 16            # sequence length
STAT_EPS = 1e-12  # module self.eps for the clamped variance
BN_EPS = 1e-5     # nn.BatchNorm1d default eps


# ---------------- Pallas kernel ----------------------------------------------
def asp_kernel(x2_ref, w1_ref, p1_ref, w2_ref, b2_ref, o_ref, *, nB, nL):
    """AttentiveStatisticsPooling forward on one lane-dense slab in VMEM.

    x2_ref : (C, B*L)   input, batch folded into the lane axis
    w1_ref : (A, 3C)    TDNN k=1 conv weight (columns ordered [x|mean|std])
    p1_ref : (A, 3)     packed [conv1_bias, bn_gamma, bn_beta]
    w2_ref : (C, A)     final k=1 conv weight
    b2_ref : (C, 1)     final conv bias
    o_ref  : (B, 2C)    pooled [mean ; std] per batch (lane-dense rows)
    """
    x2 = x2_ref[...]                                   # (C, B*L)
    w1 = w1_ref[...]
    p1 = p1_ref[...]
    w2 = w2_ref[...]
    b2 = b2_ref[...]

    Cz, BLz = x2.shape
    inv_L = 1.0 / nL
    inv_n = 1.0 / BLz

    # 0/1 batch-selection matrices (built on the VPU; no data movement,
    # no integer division).  sel[i, b] = 1 iff lane i belongs to batch b.
    ri = jax.lax.broadcasted_iota(jnp.int32, (BLz, nB), 0)
    ci = jax.lax.broadcasted_iota(jnp.int32, (BLz, nB), 1)
    lo = ci * nL
    sel = ((ri >= lo) & (ri < lo + nL)).astype(jnp.float32)       # (B*L, B)
    rt = jax.lax.broadcasted_iota(jnp.int32, (nB, BLz), 0)
    ct = jax.lax.broadcasted_iota(jnp.int32, (nB, BLz), 1)
    lo_t = rt * nL
    sel_t = ((ct >= lo_t) & (ct < lo_t + nL)).astype(jnp.float32)  # (B, B*L)

    # ---- global-context statistics (lengths=None -> uniform weights 1/L) ----
    # Two-pass per-batch mean/var, all as MXU contractions against sel.
    mean_g = jnp.dot(x2, sel, preferred_element_type=jnp.float32) * inv_L   # (C,B)
    mean_b = jnp.dot(mean_g, sel_t, preferred_element_type=jnp.float32)     # (C,B*L)
    xc = x2 - mean_b
    var_g = jnp.dot(xc * xc, sel, preferred_element_type=jnp.float32) * inv_L
    std_g = jnp.sqrt(jnp.maximum(var_g, STAT_EPS))                          # (C,B)

    # Split the k=1 conv weight instead of building the (B,3C,L) concat.
    w1_x = w1[:, 0:Cz]                                  # (A, C)
    w1_m = w1[:, Cz:2 * Cz]
    w1_s = w1[:, 2 * Cz:3 * Cz]
    b1 = p1[:, 0:1]                                     # (A, 1)
    gamma = p1[:, 1:2]
    beta = p1[:, 2:3]

    # ---- TDNN conv (k=1) + ReLU, batched over B on the lane axis ------------
    # mean/std contribution is constant over L: one (A,B) MXU op + broadcast.
    off = (jnp.dot(w1_m, mean_g, preferred_element_type=jnp.float32)
           + jnp.dot(w1_s, std_g, preferred_element_type=jnp.float32)
           + b1)                                                          # (A,B)
    off_b = jnp.dot(off, sel_t, preferred_element_type=jnp.float32)      # (A,B*L)
    h = jnp.maximum(
        jnp.dot(w1_x, x2, preferred_element_type=jnp.float32) + off_b, 0.0)

    # ---- BatchNorm1d (training-mode batch stats over (B,L), biased var) -----
    mu = jnp.sum(h, axis=1, keepdims=True) * inv_n                        # (A,1)
    hcent = h - mu
    var = jnp.sum(hcent * hcent, axis=1, keepdims=True) * inv_n
    scale = gamma * jax.lax.rsqrt(var + BN_EPS)                           # (A,1)
    shift = beta - mu * scale

    # ---- tanh -> conv (k=1) -> per-batch softmax over L -> weighted stats ---
    t = jnp.tanh(h * scale + shift)                                       # (A,B*L)
    logits = jnp.dot(w2, t, preferred_element_type=jnp.float32) + b2      # (C,B*L)

    for b in range(nB):                       # static lane slices, B is tiny
        lg = logits[:, b * nL:(b + 1) * nL]                               # (C,L)
        xb = x2[:, b * nL:(b + 1) * nL]                                   # (C,L)
        # mask is all ones (lengths=None) -> masked_fill is a no-op
        mx = jnp.max(lg, axis=1, keepdims=True)
        e = jnp.exp(lg - mx)
        # exact division kept for the 1e-4 check; at scale
        # pl.reciprocal(..., approx=True) would offload this to the EUP.
        attn = e / jnp.sum(e, axis=1, keepdims=True)                      # (C,L)

        m_w = jnp.sum(attn * xb, axis=1, keepdims=True)                   # (C,1)
        d = xb - m_w
        v_w = jnp.sum(attn * d * d, axis=1, keepdims=True)
        s_w = jnp.sqrt(jnp.maximum(v_w, STAT_EPS))                        # (C,1)

        # lane-dense row stores (one small transpose each, no width-1 stores)
        o_ref[b:b + 1, 0:Cz] = m_w.T
        o_ref[b:b + 1, Cz:2 * Cz] = s_w.T


def attentive_stats_pooling(x, w1, p1, w2, b2):
    """Wrapper: lay x out lane-dense, single-program pallas_call, reshape out."""
    Bz, Cz, Lz = x.shape
    Az = w1.shape[0]
    # Layout plumbing only: (B,C,L) -> (C,B,L) -> (C, B*L)
    x2d = jnp.transpose(x, (1, 0, 2)).reshape(Cz, Bz * Lz)

    kernel = functools.partial(asp_kernel, nB=Bz, nL=Lz)
    out2d = pl.pallas_call(
        kernel,
        out_shape=jax.ShapeDtypeStruct((Bz, 2 * Cz), jnp.float32),
        grid=(1,),
        in_specs=[
            pl.BlockSpec((Cz, Bz * Lz), lambda i: (0, 0)),
            pl.BlockSpec((Az, 3 * Cz), lambda i: (0, 0)),
            pl.BlockSpec((Az, 3), lambda i: (0, 0)),
            pl.BlockSpec((Cz, Az), lambda i: (0, 0)),
            pl.BlockSpec((Cz, 1), lambda i: (0, 0)),
        ],
        out_specs=pl.BlockSpec((Bz, 2 * Cz), lambda i: (0, 0)),
        compiler_params=pltpu.CompilerParams(
            dimension_semantics=("arbitrary",)),
    )(x2d, w1, p1, w2, b2)
    return out2d[:, :, None]                            # (B, 2C, 1)


# ---------------- plain-JAX reference (for correctness check) ----------------
def asp_ref(x, w1, p1, w2, b2):
    Bz, Cz, Lz = x.shape
    # lengths=None -> mask all ones, weights 1/L
    w = jnp.full((Bz, 1, Lz), 1.0 / Lz, dtype=jnp.float32)
    mean = jnp.sum(w * x, axis=2)                                # (B, C)
    std = jnp.sqrt(jnp.maximum(
        jnp.sum(w * (x - mean[:, :, None]) ** 2, axis=2), STAT_EPS))
    attn_in = jnp.concatenate(
        [x,
         jnp.broadcast_to(mean[:, :, None], (Bz, Cz, Lz)),
         jnp.broadcast_to(std[:, :, None], (Bz, Cz, Lz))], axis=1)   # (B,3C,L)
    # TDNNBlock: Conv1d(k=1) -> ReLU -> BatchNorm1d (training-mode stats)
    h = jnp.einsum("ac,bcl->bal", w1, attn_in) + p1[:, 0][None, :, None]
    h = jnp.maximum(h, 0.0)
    mu = h.mean(axis=(0, 2), keepdims=True)
    var = ((h - mu) ** 2).mean(axis=(0, 2), keepdims=True)
    hb = ((h - mu) / jnp.sqrt(var + BN_EPS) * p1[:, 1][None, :, None]
          + p1[:, 2][None, :, None])
    t = jnp.tanh(hb)
    logits = jnp.einsum("ca,bal->bcl", w2, t) + b2[None, :, :]
    attn = jax.nn.softmax(logits, axis=2)
    mean_w = jnp.sum(attn * x, axis=2)
    std_w = jnp.sqrt(jnp.maximum(
        jnp.sum(attn * (x - mean_w[:, :, None]) ** 2, axis=2), STAT_EPS))
    return jnp.concatenate([mean_w, std_w], axis=1)[:, :, None]


# ---------------- main --------------------------------------------------------
if __name__ == "__main__":
    key = jax.random.PRNGKey(0)
    kx, kw1, kb1, kg, kbt, kw2, kb2 = jax.random.split(key, 7)

    x = jax.random.normal(kx, (B, C, L), dtype=jnp.float32)

    # PyTorch layouts: tdnn conv weight (A, 3C, 1) -> squeeze -> (A, 3C);
    # second conv weight (C, A, 1) -> (C, A); bias (C,) -> (C, 1).
    w1 = 0.3 * jax.random.normal(kw1, (A, 3 * C), dtype=jnp.float32)
    b1 = 0.1 * jax.random.normal(kb1, (A,), dtype=jnp.float32)
    gamma = 1.0 + 0.1 * jax.random.normal(kg, (A,), dtype=jnp.float32)
    beta = 0.1 * jax.random.normal(kbt, (A,), dtype=jnp.float32)
    p1 = jnp.stack([b1, gamma, beta], axis=1)                    # (A, 3)
    w2 = 0.3 * jax.random.normal(kw2, (C, A), dtype=jnp.float32)
    b2 = 0.1 * jax.random.normal(kb2, (C, 1), dtype=jnp.float32)

    out = jax.block_until_ready(attentive_stats_pooling(x, w1, p1, w2, b2))
    ref = jax.block_until_ready(asp_ref(x, w1, p1, w2, b2))

    assert out.shape == (B, 2 * C, 1), out.shape
    assert jnp.allclose(out, ref, rtol=1e-4, atol=1e-4), (
        float(jnp.max(jnp.abs(out - ref))))

    print("KERNEL_OK")
</pallas_src>

<mosaic_0001>
module attributes {stable_mosaic.version = 11 : i64} {
  func.func @asp_kernel(%arg0: i32, %arg1: memref<8x32xf32, #tpu.memory_space<vmem>>, %arg2: memref<16x24xf32, #tpu.memory_space<vmem>>, %arg3: memref<16x3xf32, #tpu.memory_space<vmem>>, %arg4: memref<8x16xf32, #tpu.memory_space<vmem>>, %arg5: memref<8x1xf32, #tpu.memory_space<vmem>>, %arg6: memref<2x16xf32, #tpu.memory_space<vmem>>) attributes {dimension_semantics = [#tpu.dimension_semantics<arbitrary>], iteration_bounds = array<i64: 1>, scalar_prefetch = 0 : i64, scratch_operands = 0 : i64, tpu.core_type = #tpu.core_type<tc>, window_params = [{pipeline_mode = #tpu.pipeline_mode<synchronous>, transform_indices = @transform_0, window_bounds = array<i64: 8, 32>}, {pipeline_mode = #tpu.pipeline_mode<synchronous>, transform_indices = @transform_1, window_bounds = array<i64: 16, 24>}, {pipeline_mode = #tpu.pipeline_mode<synchronous>, transform_indices = @transform_2, window_bounds = array<i64: 16, 3>}, {pipeline_mode = #tpu.pipeline_mode<synchronous>, transform_indices = @transform_3, window_bounds = array<i64: 8, 16>}, {pipeline_mode = #tpu.pipeline_mode<synchronous>, transform_indices = @transform_4, window_bounds = array<i64: 8, 1>}, {pipeline_mode = #tpu.pipeline_mode<synchronous>, transform_indices = @transform_5, window_bounds = array<i64: 2, 16>}]} {
    %c0 = arith.constant 0 : index
    %c0_0 = arith.constant 0 : index
    %0 = vector.load %arg1[%c0, %c0_0] : memref<8x32xf32, #tpu.memory_space<vmem>>, vector<8x32xf32>
    %c0_1 = arith.constant 0 : index
    %c0_2 = arith.constant 0 : index
    %1 = vector.load %arg2[%c0_1, %c0_2] : memref<16x24xf32, #tpu.memory_space<vmem>>, vector<16x24xf32>
    %c0_3 = arith.constant 0 : index
    %c0_4 = arith.constant 0 : index
    %2 = vector.load %arg3[%c0_3, %c0_4] : memref<16x3xf32, #tpu.memory_space<vmem>>, vector<16x3xf32>
    %c0_5 = arith.constant 0 : index
    %c0_6 = arith.constant 0 : index
    %3 = vector.load %arg4[%c0_5, %c0_6] : memref<8x16xf32, #tpu.memory_space<vmem>>, vector<8x16xf32>
    %c0_7 = arith.constant 0 : index
    %c0_8 = arith.constant 0 : index
    %4 = vector.load %arg5[%c0_7, %c0_8] : memref<8x1xf32, #tpu.memory_space<vmem>>, vector<8x1xf32>
    %5 = tpu.iota {dimensions = array<i32: 0>} : vector<32x2xi32>
    %6 = tpu.iota {dimensions = array<i32: 1>} : vector<32x2xi32>
    %c16_i32 = arith.constant 16 : i32
    %7 = vector.broadcast %c16_i32 : i32 to vector<32x2xi32>
    %8 = arith.muli %6, %7 : vector<32x2xi32>
    %9 = arith.cmpi sge, %5, %8 : vector<32x2xi32>
    %c16_i32_9 = arith.constant 16 : i32
    %10 = vector.broadcast %c16_i32_9 : i32 to vector<32x2xi32>
    %11 = arith.addi %8, %10 : vector<32x2xi32>
    %12 = arith.cmpi slt, %5, %11 : vector<32x2xi32>
    %13 = arith.andi %9, %12 : vector<32x2xi1>
    %14 = arith.extui %13 : vector<32x2xi1> to vector<32x2xi32>
    %15 = arith.sitofp %14 : vector<32x2xi32> to vector<32x2xf32>
    %16 = tpu.iota {dimensions = array<i32: 0>} : vector<2x32xi32>
    %17 = tpu.iota {dimensions = array<i32: 1>} : vector<2x32xi32>
    %c16_i32_10 = arith.constant 16 : i32
    %18 = vector.broadcast %c16_i32_10 : i32 to vector<2x32xi32>
    %19 = arith.muli %16, %18 : vector<2x32xi32>
    %20 = arith.cmpi sge, %17, %19 : vector<2x32xi32>
    %c16_i32_11 = arith.constant 16 : i32
    %21 = vector.broadcast %c16_i32_11 : i32 to vector<2x32xi32>
    %22 = arith.addi %19, %21 : vector<2x32xi32>
    %23 = arith.cmpi slt, %17, %22 : vector<2x32xi32>
    %24 = arith.andi %20, %23 : vector<2x32xi1>
    %25 = arith.extui %24 : vector<2x32xi1> to vector<2x32xi32>
    %26 = arith.sitofp %25 : vector<2x32xi32> to vector<2x32xf32>
    %cst = arith.constant dense<0.000000e+00> : vector<8x2xf32>
    %27 = tpu.matmul %0, %15, %cst {dimension_numbers = #tpu.dot_dimension_numbers<[1], [0], [0], [1], [0, 0, 1, 1], [], []>} : vector<8x32xf32>, vector<32x2xf32>, vector<8x2xf32> -> vector<8x2xf32>
    %cst_12 = arith.constant 6.250000e-02 : f32
    %28 = vector.broadcast %cst_12 : f32 to vector<8x2xf32>
    %29 = arith.mulf %27, %28 : vector<8x2xf32>
    %cst_13 = arith.constant dense<0.000000e+00> : vector<8x32xf32>
    %30 = tpu.matmul %29, %26, %cst_13 {dimension_numbers = #tpu.dot_dimension_numbers<[1], [0], [0], [1], [0, 0, 1, 1], [], []>} : vector<8x2xf32>, vector<2x32xf32>, vector<8x32xf32> -> vector<8x32xf32>
    %31 = arith.subf %0, %30 : vector<8x32xf32>
    %32 = arith.mulf %31, %31 : vector<8x32xf32>
    %cst_14 = arith.constant dense<0.000000e+00> : vector<8x2xf32>
    %33 = tpu.matmul %32, %15, %cst_14 {dimension_numbers = #tpu.dot_dimension_numbers<[1], [0], [0], [1], [0, 0, 1, 1], [], []>} : vector<8x32xf32>, vector<32x2xf32>, vector<8x2xf32> -> vector<8x2xf32>
    %cst_15 = arith.constant 6.250000e-02 : f32
    %34 = vector.broadcast %cst_15 : f32 to vector<8x2xf32>
    %35 = arith.mulf %33, %34 : vector<8x2xf32>
    %cst_16 = arith.constant 9.99999996E-13 : f32
    %36 = vector.broadcast %cst_16 : f32 to vector<8x2xf32>
    %37 = arith.maximumf %35, %36 : vector<8x2xf32>
    %38 = math.sqrt %37 : vector<8x2xf32>
    %39 = vector.extract_strided_slice %1 {offsets = [0, 0], sizes = [16, 8], strides = [1, 1]} : vector<16x24xf32> to vector<16x8xf32>
    %40 = vector.extract_strided_slice %1 {offsets = [0, 8], sizes = [16, 8], strides = [1, 1]} : vector<16x24xf32> to vector<16x8xf32>
    %41 = vector.extract_strided_slice %1 {offsets = [0, 16], sizes = [16, 8], strides = [1, 1]} : vector<16x24xf32> to vector<16x8xf32>
    %42 = vector.extract_strided_slice %2 {offsets = [0, 0], sizes = [16, 1], strides = [1, 1]} : vector<16x3xf32> to vector<16x1xf32>
    %43 = vector.extract_strided_slice %2 {offsets = [0, 1], sizes = [16, 1], strides = [1, 1]} : vector<16x3xf32> to vector<16x1xf32>
    %44 = vector.extract_strided_slice %2 {offsets = [0, 2], sizes = [16, 1], strides = [1, 1]} : vector<16x3xf32> to vector<16x1xf32>
    %cst_17 = arith.constant dense<0.000000e+00> : vector<16x2xf32>
    %45 = tpu.matmul %40, %29, %cst_17 {dimension_numbers = #tpu.dot_dimension_numbers<[1], [0], [0], [1], [0, 0, 1, 1], [], []>} : vector<16x8xf32>, vector<8x2xf32>, vector<16x2xf32> -> vector<16x2xf32>
    %cst_18 = arith.constant dense<0.000000e+00> : vector<16x2xf32>
    %46 = tpu.matmul %41, %38, %cst_18 {dimension_numbers = #tpu.dot_dimension_numbers<[1], [0], [0], [1], [0, 0, 1, 1], [], []>} : vector<16x8xf32>, vector<8x2xf32>, vector<16x2xf32> -> vector<16x2xf32>
    %47 = arith.addf %45, %46 : vector<16x2xf32>
    %48 = vector.broadcast %42 : vector<16x1xf32> to vector<16x2xf32>
    %49 = arith.addf %47, %48 : vector<16x2xf32>
    %cst_19 = arith.constant dense<0.000000e+00> : vector<16x32xf32>
    %50 = tpu.matmul %49, %26, %cst_19 {dimension_numbers = #tpu.dot_dimension_numbers<[1], [0], [0], [1], [0, 0, 1, 1], [], []>} : vector<16x2xf32>, vector<2x32xf32>, vector<16x32xf32> -> vector<16x32xf32>
    %cst_20 = arith.constant dense<0.000000e+00> : vector<16x32xf32>
    %51 = tpu.matmul %39, %0, %cst_20 {dimension_numbers = #tpu.dot_dimension_numbers<[1], [0], [0], [1], [0, 0, 1, 1], [], []>} : vector<16x8xf32>, vector<8x32xf32>, vector<16x32xf32> -> vector<16x32xf32>
    %52 = arith.addf %51, %50 : vector<16x32xf32>
    %cst_21 = arith.constant 0.000000e+00 : f32
    %53 = vector.broadcast %cst_21 : f32 to vector<16x32xf32>
    %54 = arith.maximumf %52, %53 : vector<16x32xf32>
    %cst_22 = arith.constant dense<0.000000e+00> : vector<16xf32>
    %55 = vector.multi_reduction <add>, %54, %cst_22 [1] : vector<16x32xf32> to vector<16xf32>
    %56 = vector.shape_cast %55 : vector<16xf32> to vector<16x1xf32>
    %cst_23 = arith.constant 3.125000e-02 : f32
    %57 = vector.broadcast %cst_23 : f32 to vector<16x1xf32>
    %58 = arith.mulf %56, %57 : vector<16x1xf32>
    %59 = vector.broadcast %58 : vector<16x1xf32> to vector<16x32xf32>
    %60 = arith.subf %54, %59 : vector<16x32xf32>
    %61 = arith.mulf %60, %60 : vector<16x32xf32>
    %cst_24 = arith.constant dense<0.000000e+00> : vector<16xf32>
    %62 = vector.multi_reduction <add>, %61, %cst_24 [1] : vector<16x32xf32> to vector<16xf32>
    %63 = vector.shape_cast %62 : vector<16xf32> to vector<16x1xf32>
    %cst_25 = arith.constant 3.125000e-02 : f32
    %64 = vector.broadcast %cst_25 : f32 to vector<16x1xf32>
    %65 = arith.mulf %63, %64 : vector<16x1xf32>
    %cst_26 = arith.constant 9.99999974E-6 : f32
    %66 = vector.broadcast %cst_26 : f32 to vector<16x1xf32>
    %67 = arith.addf %65, %66 : vector<16x1xf32>
    %68 = math.rsqrt %67 : vector<16x1xf32>
    %69 = arith.mulf %43, %68 : vector<16x1xf32>
    %70 = arith.mulf %58, %69 : vector<16x1xf32>
    %71 = arith.subf %44, %70 : vector<16x1xf32>
    %72 = vector.broadcast %69 : vector<16x1xf32> to vector<16x32xf32>
    %73 = arith.mulf %54, %72 : vector<16x32xf32>
    %74 = vector.broadcast %71 : vector<16x1xf32> to vector<16x32xf32>
    %75 = arith.addf %73, %74 : vector<16x32xf32>
    %76 = math.tanh %75 : vector<16x32xf32>
    %cst_27 = arith.constant dense<0.000000e+00> : vector<8x32xf32>
    %77 = tpu.matmul %3, %76, %cst_27 {dimension_numbers = #tpu.dot_dimension_numbers<[1], [0], [0], [1], [0, 0, 1, 1], [], []>} : vector<8x16xf32>, vector<16x32xf32>, vector<8x32xf32> -> vector<8x32xf32>
    %78 = vector.broadcast %4 : vector<8x1xf32> to vector<8x32xf32>
    %79 = arith.addf %77, %78 : vector<8x32xf32>
    %80 = vector.extract_strided_slice %79 {offsets = [0, 0], sizes = [8, 16], strides = [1, 1]} : vector<8x32xf32> to vector<8x16xf32>
    %81 = vector.extract_strided_slice %0 {offsets = [0, 0], sizes = [8, 16], strides = [1, 1]} : vector<8x32xf32> to vector<8x16xf32>
    %cst_28 = arith.constant dense<0xFF800000> : vector<8xf32>
    %82 = vector.multi_reduction <maximumf>, %80, %cst_28 [1] : vector<8x16xf32> to vector<8xf32>
    %83 = vector.shape_cast %82 : vector<8xf32> to vector<8x1xf32>
    %84 = vector.broadcast %83 : vector<8x1xf32> to vector<8x16xf32>
    %85 = arith.subf %80, %84 : vector<8x16xf32>
    %86 = math.exp %85 : vector<8x16xf32>
    %cst_29 = arith.constant dense<0.000000e+00> : vector<8xf32>
    %87 = vector.multi_reduction <add>, %86, %cst_29 [1] : vector<8x16xf32> to vector<8xf32>
    %88 = vector.shape_cast %87 : vector<8xf32> to vector<8x1xf32>
    %89 = vector.broadcast %88 : vector<8x1xf32> to vector<8x16xf32>
    %90 = arith.divf %86, %89 : vector<8x16xf32>
    %91 = arith.mulf %90, %81 : vector<8x16xf32>
    %cst_30 = arith.constant dense<0.000000e+00> : vector<8xf32>
    %92 = vector.multi_reduction <add>, %91, %cst_30 [1] : vector<8x16xf32> to vector<8xf32>
    %93 = vector.shape_cast %92 : vector<8xf32> to vector<8x1xf32>
    %94 = vector.broadcast %93 : vector<8x1xf32> to vector<8x16xf32>
    %95 = arith.subf %81, %94 : vector<8x16xf32>
    %96 = arith.mulf %90, %95 : vector<8x16xf32>
    %97 = arith.mulf %96, %95 : vector<8x16xf32>
    %cst_31 = arith.constant dense<0.000000e+00> : vector<8xf32>
    %98 = vector.multi_reduction <add>, %97, %cst_31 [1] : vector<8x16xf32> to vector<8xf32>
    %99 = vector.shape_cast %98 : vector<8xf32> to vector<8x1xf32>
    %cst_32 = arith.constant 9.99999996E-13 : f32
    %100 = vector.broadcast %cst_32 : f32 to vector<8x1xf32>
    %101 = arith.maximumf %99, %100 : vector<8x1xf32>
    %102 = math.sqrt %101 : vector<8x1xf32>
    %103 = tpu.transpose %93, [1, 0] : vector<8x1xf32> -> vector<1x8xf32>
    %c0_33 = arith.constant 0 : index
    %c0_34 = arith.constant 0 : index
    %104 = vector.load %arg6[%c0_33, %c0_34] : memref<2x16xf32, #tpu.memory_space<vmem>>, vector<1x8xf32>
    tpu.vector_store %arg6[%c0_33, %c0_34], %103 {strides = array<i32>} : memref<2x16xf32, #tpu.memory_space<vmem>>, vector<1x8xf32>,
    %105 = tpu.transpose %102, [1, 0] : vector<8x1xf32> -> vector<1x8xf32>
    %c0_35 = arith.constant 0 : index
    %c8 = arith.constant 8 : index
    %106 = vector.load %arg6[%c0_35, %c8] : memref<2x16xf32, #tpu.memory_space<vmem>>, vector<1x8xf32>
    tpu.vector_store %arg6[%c0_35, %c8], %105 {strides = array<i32>} : memref<2x16xf32, #tpu.memory_space<vmem>>, vector<1x8xf32>,
    %107 = vector.extract_strided_slice %79 {offsets = [0, 16], sizes = [8, 16], strides = [1, 1]} : vector<8x32xf32> to vector<8x16xf32>
    %108 = vector.extract_strided_slice %0 {offsets = [0, 16], sizes = [8, 16], strides = [1, 1]} : vector<8x32xf32> to vector<8x16xf32>
    %cst_36 = arith.constant dense<0xFF800000> : vector<8xf32>
    %109 = vector.multi_reduction <maximumf>, %107, %cst_36 [1] : vector<8x16xf32> to vector<8xf32>
    %110 = vector.shape_cast %109 : vector<8xf32> to vector<8x1xf32>
    %111 = vector.broadcast %110 : vector<8x1xf32> to vector<8x16xf32>
    %112 = arith.subf %107, %111 : vector<8x16xf32>
    %113 = math.exp %112 : vector<8x16xf32>
    %cst_37 = arith.constant dense<0.000000e+00> : vector<8xf32>
    %114 = vector.multi_reduction <add>, %113, %cst_37 [1] : vector<8x16xf32> to vector<8xf32>
    %115 = vector.shape_cast %114 : vector<8xf32> to vector<8x1xf32>
    %116 = vector.broadcast %115 : vector<8x1xf32> to vector<8x16xf32>
    %117 = arith.divf %113, %116 : vector<8x16xf32>
    %118 = arith.mulf %117, %108 : vector<8x16xf32>
    %cst_38 = arith.constant dense<0.000000e+00> : vector<8xf32>
    %119 = vector.multi_reduction <add>, %118, %cst_38 [1] : vector<8x16xf32> to vector<8xf32>
    %120 = vector.shape_cast %119 : vector<8xf32> to vector<8x1xf32>
    %121 = vector.broadcast %120 : vector<8x1xf32> to vector<8x16xf32>
    %122 = arith.subf %108, %121 : vector<8x16xf32>
    %123 = arith.mulf %117, %122 : vector<8x16xf32>
    %124 = arith.mulf %123, %122 : vector<8x16xf32>
    %cst_39 = arith.constant dense<0.000000e+00> : vector<8xf32>
    %125 = vector.multi_reduction <add>, %124, %cst_39 [1] : vector<8x16xf32> to vector<8xf32>
    %126 = vector.shape_cast %125 : vector<8xf32> to vector<8x1xf32>
    %cst_40 = arith.constant 9.99999996E-13 : f32
    %127 = vector.broadcast %cst_40 : f32 to vector<8x1xf32>
    %128 = arith.maximumf %126, %127 : vector<8x1xf32>
    %129 = math.sqrt %128 : vector<8x1xf32>
    %130 = tpu.transpose %120, [1, 0] : vector<8x1xf32> -> vector<1x8xf32>
    %c1 = arith.constant 1 : index
    %c0_41 = arith.constant 0 : index
    %131 = vector.load %arg6[%c1, %c0_41] : memref<2x16xf32, #tpu.memory_space<vmem>>, vector<1x8xf32>
    tpu.vector_store %arg6[%c1, %c0_41], %130 {strides = array<i32>} : memref<2x16xf32, #tpu.memory_space<vmem>>, vector<1x8xf32>,
    %132 = tpu.transpose %129, [1, 0] : vector<8x1xf32> -> vector<1x8xf32>
    %c1_42 = arith.constant 1 : index
    %c8_43 = arith.constant 8 : index
    %133 = vector.load %arg6[%c1_42, %c8_43] : memref<2x16xf32, #tpu.memory_space<vmem>>, vector<1x8xf32>
    tpu.vector_store %arg6[%c1_42, %c8_43], %132 {strides = array<i32>} : memref<2x16xf32, #tpu.memory_space<vmem>>, vector<1x8xf32>,
    return
  }
  func.func @transform_0(%arg0: i32) -> (i32, i32) {
    %c0_i32 = arith.constant 0 : i32
    %c0_i32_0 = arith.constant 0 : i32
    %c0_i32_1 = arith.constant 0 : i32
    return %c0_i32, %c0_i32_0 : i32, i32
  }
  func.func @transform_1(%arg0: i32) -> (i32, i32) {
    %c0_i32 = arith.constant 0 : i32
    %c0_i32_0 = arith.constant 0 : i32
    %c0_i32_1 = arith.constant 0 : i32
    return %c0_i32, %c0_i32_0 : i32, i32
  }
  func.func @transform_2(%arg0: i32) -> (i32, i32) {
    %c0_i32 = arith.constant 0 : i32
    %c0_i32_0 = arith.constant 0 : i32
    %c0_i32_1 = arith.constant 0 : i32
    return %c0_i32, %c0_i32_0 : i32, i32
  }
  func.func @transform_3(%arg0: i32) -> (i32, i32) {
    %c0_i32 = arith.constant 0 : i32
    %c0_i32_0 = arith.constant 0 : i32
    %c0_i32_1 = arith.constant 0 : i32
    return %c0_i32, %c0_i32_0 : i32, i32
  }
  func.func @transform_4(%arg0: i32) -> (i32, i32) {
    %c0_i32 = arith.constant 0 : i32
    %c0_i32_0 = arith.constant 0 : i32
    %c0_i32_1 = arith.constant 0 : i32
    return %c0_i32, %c0_i32_0 : i32, i32
  }
  func.func @transform_5(%arg0: i32) -> (i32, i32) {
    %c0_i32 = arith.constant 0 : i32
    %c0_i32_0 = arith.constant 0 : i32
    %c0_i32_1 = arith.constant 0 : i32
    return %c0_i32, %c0_i32_0 : i32, i32
  }
}

</mosaic_0001>

<bundles_post_ra>
// kernel: tpu_custom_call.1
= control target key start
LH: loop header
LB: loop body
LE: loop exit
PB: predicated region body
PF: predicated region fallthrough
CT: control target
= control target key end

     0   :  { %10 = vsyncpa [#allocation3], 0  ;;  %s928_s0 = inlined_call_operand.vmem [shape: f32[8,32], index: 0, kind: input, shape index: {}]   ;;  %s929_s1 = inlined_call_operand.vmem [shape: f32[16,24], index: 1, kind: input, shape index: {}]   ;;  %s930_s2 = inlined_call_operand.vmem [shape: f32[16,3], index: 2, kind: input, shape index: {}]   ;;  %s931_s3 = inlined_call_operand.hbm [shape: f32[8,16], index: 3, kind: input, shape index: {}]   ;;  %s932_s4 = inlined_call_operand.vmem [shape: f32[8,1], index: 4, kind: input, shape index: {}]   ;;  %s933_s5 = inlined_call_operand.hbm [shape: f32[2,16], index: 5, kind: output, shape index: {}]  }
   0x1   :  { %11 = vsyncpa [#allocation4], 0  ;;  %s23_s20 = sshll.u32 %s931_s3, 4  ;;  %s801_s21 = smov [#allocation2]   ;;  %s24_s20 = int_to_ptr.hbm [resolvable:$true] %s23_s20 }
   0x2   :  { %s25_s22 = sshll.u32 %s801_s21, 4  ;;  %s26_s22 = int_to_ptr.vmem [resolvable:$true] %s25_s22 }
   0x3   :  { %28 = dma.hbm_to_vmem [thread:$0]  %s24_s20, 128, %s26_s22, [#allocation3]  }
   0x4   :  { %797 = dma.done.wait [#allocation3], 128  }
   0x5   :  { %798 = vsyncadd [#allocation3], 4294967168  ;;  %v42_v0 = vlaneseq  ;;  %v802_v8 = vmov 1.0   ;;  %v848_v9 = vld [vmem:[%s928_s0] sm:$0xff]  ;;  %vm78_vm12 = vcmask 261120   ;;  %v803_v12 = vmov 0.0  }
   0x6   :  { %v36_v16 = vld [vmem:[%s929_s1] sm:$0xff]  ;;  %v37_v17 = vld [vmem:[%s929_s1 + $0x8] sm:$0xff]  ;;  %s804_s27 = smov 112   ;;  %s805_s28 = smov 120   ;;  %v806_v29 = vmov 0  }
   0x7   :  { %v43_v1 = vshrl.u32 %v42_v0, 7  ;;  %v48_v2 = vand.u32 127, %v42_v0  ;;  %172 = vrot.lane.b32.xlu0 %v36_v16, %s804_s27  ;;  %174 = vrot.lane.b32.xlu1 %v37_v17, %s804_s27  ;;  %v869_v28 = vld [vmem:[%s930_s2] sm:$0xff]  ;;  %v878_v30 = vld [vmem:[%s930_s2 + $0x8] sm:$0xff]  ;;  %s808_s2 = smov 1   ;;  %s811_s9 = smov [#allocation5]  }
   0x8   :  { %720 = vset.pattern.permute.xlu2 %v806_v29  ;;  %s670_s10 = sshll.u32 %s811_s9, 4  ;;  %s672_s13 = sshll.u32 %s933_s5, 4  ;;  %s671_s10 = int_to_ptr.vmem [resolvable:$true] %s670_s10  ;;  %s673_s13 = int_to_ptr.hbm [resolvable:$true] %s672_s13 }
   0x9   :  { %v46_v3 = vadd.s32 24, %v43_v1  ;;  %v49_v4 = vmul.u32 16, %v48_v2  ;;  %v45_v5 = vadd.s32 16, %v43_v1  ;;  %v44_v6 = vadd.s32 8, %v43_v1  ;;  %237 = vperm.xlu2 %720, %v869_v28  }
   0xa   :  { %v71_v10 = vmul.u32 16, %v43_v1 }
   0xb   :  { %vm53_vm0 = vcmp.ge.s32.totalorder %v46_v3, %v49_v4  ;;  %v54_v7 = vadd.s32 16, %v49_v4  ;;  %vm52_vm1 = vcmp.ge.s32.totalorder %v45_v5, %v49_v4  ;;  %vm51_vm4 = vcmp.ge.s32.totalorder %v44_v6, %v49_v4 }
   0xc   :  { %vm50_vm8 = vcmp.ge.s32.totalorder %v43_v1, %v49_v4  ;;  %v73_v11 = vadd.s32 16, %v71_v10  ;;  %vm72_vm13 = vcmp.ge.s32.totalorder %v48_v2, %v71_v10 }
   0xd   :  { %vm58_vm2 = vcmp.lt.s32.totalorder %v46_v3, %v54_v7  ;;  %vm57_vm3 = vcmp.lt.s32.totalorder %v45_v5, %v54_v7  ;;  %vm56_vm5 = vcmp.lt.s32.totalorder %v44_v6, %v54_v7  ;;  %vm55_vm9 = vcmp.lt.s32.totalorder %v43_v1, %v54_v7 }
   0xe   :  { %vm62_vm6 = vmand %vm53_vm0, %vm58_vm2  ;;  %vm74_vm14 = vcmp.lt.s32.totalorder %v48_v2, %v73_v11  ;;  %vm107_vm0 = vcmask 1041408   ;;  %vm176_vm2 = vcmask 64512   ;;  %v807_v7 = vmov 1  }
   0xf   :  { %687 = vmatpush.msk.msra.mxu0 %vm62_vm6, %v802_v8  ;;  %vm61_vm7 = vmand %vm52_vm1, %vm57_vm3  ;;  %694 = vmatpush.msk.msra.mxu2 %vm62_vm6, %v802_v8  ;;  %vm103_vm1 = vcmask 15360  }
  0x10   :  { %vm60_vm10 = vmand %vm51_vm4, %vm56_vm5  ;;  %204 = vrot.lane.b32.xlu0 %v36_v16, %s805_s28  ;;  %206 = vrot.lane.b32.xlu1 %v37_v17, %s805_s28 }
  0x11   :  { %688 = vmatpush.msk.msra.mxu0 %vm61_vm7, %v802_v8  ;;  %695 = vmatpush.msk.msra.mxu2 %vm61_vm7, %v802_v8  ;;  %vm59_vm11 = vmand %vm50_vm8, %vm55_vm9 }
  0x12   :  { %vm75_vm15 = vmand %vm72_vm13, %vm74_vm14  ;;  %242 = vperm.xlu2 %720, %v878_v30   ;;  %722 = vset.pattern.permute.xlu0 %v807_v7 }
  0x13   :  { %689 = vmatpush.msk.msra.mxu0 %vm60_vm10, %v802_v8  ;;  %696 = vmatpush.msk.msra.mxu2 %vm60_vm10, %v802_v8  ;;  %v686_v13 = vsel %vm75_vm15, 1.0, %v803_v12 }
  0x14   :  { %692 = vmatpush.msk.msra.mxu1 %vm107_vm0, %v686_v13 }
  0x15   :  { %690 = vmatpush.msk.msra.mxu0 %vm59_vm11, %v802_v8  ;;  %697 = vmatpush.msk.msra.mxu2 %vm59_vm11, %v802_v8  ;;  %vm392_vm11 = vcmask 130048  }
  0x16   :  { %691 = vmatmul.msk.f32.vlgmr.msra.gmra.mxu0 %vm78_vm12, %v848_v9 }
  0x17   :  { %295 = vmatpush.msrb.mxu2 %v848_v9  ;;  %703 = vmatpush.msk.msrb.mxu0 %vm107_vm0, %v686_v13 }
  0x1a   :  { %721 = vset.pattern.permute.xlu2 %v807_v7 }
  0x63   :  { %v238_v42 = vpop.permute.xlu2 %237 }
  0x6c   :  { %v243_v49 = vpop.permute.xlu2 %242 }
  0x79   :  { %v173_v21 = vpop.permute.xlu0 %172  ;;  %v175_v22 = vpop.permute.xlu1 %174 }
  0x82   :  { %v205_v23 = vpop.permute.xlu0 %204  ;;  %v207_v27 = vpop.permute.xlu1 %206 }
  0x93   :  { %v99_v14 = vpop.f32.mrf.mxu0 }
  0x94   :  { %v102_v15 = vmul.f32 0.0625, %v99_v14 }
  0x96   :  { %693 = vmatmul.msk.f32.vlgmr.msra.gmra.mxu1 %vm103_vm1, %v102_v15 }
  0x97   :  { %227 = vmatpush.msrb.mxu1 %v102_v15 }
  0x9e   :  { %701 = vmatmul.msk.f32.vlgmr.msrb.gmra.mxu1 %vm176_vm2, %v205_v23 }
  0xa6   :  { %702 = vmatmul.msk.f32.gmra.mxu1 %vm176_vm2, %v207_v27 }
 0x113   :  { %v128_v18 = vpop.f32.mrf.mxu1 }
 0x114   :  { %v131_v19 = vsub.f32 %v848_v9, %v128_v18 }
 0x116   :  { %v132_v20 = vmul.f32 %v131_v19, %v131_v19 }
 0x118   :  { %698 = vmatmul.msk.f32.vlgmr.msra.gmra.mxu2 %vm78_vm12, %v132_v20 }
 0x11b   :  { %v229_v41 = vpop.f32.mrf.mxu1 }
 0x120   :  { %706 = vmatmul.msk.f32.vlgmr.msrb.gmra.mxu2 %vm176_vm2, %v36_v16 }
 0x123   :  { %v232_v46 = vpop.f32.mrf.mxu1 }
 0x128   :  { %707 = vmatmul.msk.f32.gmra.mxu2 %vm176_vm2, %v37_v17 }
 0x19b   :  { %v153_v24 = vpop.f32.mrf.mxu2 }
 0x19c   :  { %v156_v25 = vmul.f32 0.0625, %v153_v24 }
 0x19e   :  { %v157_v26 = vmax.f32 %v156_v25, 1e-12 }
 0x1a0   :  { %727 = vrsqrt.f32 %v157_v26  ;;  %vm165_vm3 = vcmp.eq.f32.partialorder %v157_v26, inf  ;;  %v168_v38 = vand.u32 2147483648, %v157_v26  ;;  %vm167_vm4 = vcmp.eq.f32.partialorder %v157_v26, 0.0 }
 0x1a3   :  { %v297_v51 = vpop.f32.mrf.mxu2 }
 0x1a6   :  { %v728_v31 = vpop.eup %727 }
 0x1a7   :  { %v159_v32 = vmul.f32 %v728_v31, %v157_v26 }
 0x1a9   :  { %v160_v33 = vmul.f32 %v728_v31, %v159_v32 }
 0x1ab   :  { %v161_v34 = vmul.f32 0.5, %v160_v33  ;;  %v300_v56 = vpop.f32.mrf.mxu2 }
 0x1ad   :  { %v162_v35 = vsub.f32 1.5, %v161_v34 }
 0x1af   :  { %v163_v36 = vmul.f32 %v728_v31, %v162_v35 }
 0x1b1   :  { %v164_v37 = vmul.f32 %v163_v36, %v157_v26  ;;  %v809_v36 = vmov 2  }
 0x1b2   :  { %723 = vset.pattern.permute.xlu1 %v809_v36 }
 0x1b3   :  { %v166_v39 = vsel %vm165_vm3, %v157_v26, %v164_v37 }
 0x1b4   :  { %v169_v40 = vsel %vm167_vm4, %v168_v38, %v166_v39 }
 0x1b5   :  { %196 = vmatpush.msra.mxu3 %v169_v40 }
 0x1b6   :  { %699 = vmatmul.msk.f32.vlgmr.msra.gmra.mxu3 %vm176_vm2, %v173_v21 }
 0x1be   :  { %700 = vmatmul.msk.f32.gmra.mxu3 %vm176_vm2, %v175_v22 }
 0x239   :  { %v198_v43 = vpop.f32.mrf.mxu3 }
 0x23a   :  { %v230_v44 = vadd.f32 %v229_v41, %v198_v43  ;;  %v41_v41 = vld [vmem:[%s932_s4] sm:$0xff]  ;;  %s810_s4 = smov 8  }
 0x23c   :  { %v245_v45 = vadd.f32 %v238_v42, %v230_v44 }
 0x23e   :  { %704 = vmatmul.msk.f32.vlgmr.msrb.gmra.mxu0 %vm103_vm1, %v245_v45 }
 0x241   :  { %v201_v47 = vpop.f32.mrf.mxu3 }
 0x242   :  { %v233_v48 = vadd.f32 %v232_v46, %v201_v47 }
 0x244   :  { %v246_v50 = vadd.f32 %v243_v49, %v233_v48  ;;  %v40_v49 = vld [vmem:[#allocation2] sm:$0xff] }
 0x246   :  { %705 = vmatmul.msk.f32.gmra.mxu0 %vm103_vm1, %v246_v50 }
 0x2bb   :  { %v270_v52 = vpop.f32.mrf.mxu0 }
 0x2bc   :  { %v298_v53 = vadd.f32 %v297_v51, %v270_v52 }
 0x2be   :  { %v885_v54 = vmax.f32 %v298_v53, 0.0 }
 0x2c0   :  { %v305_v55 = vsel %vm78_vm12, %v885_v54, 0.0 }
 0x2c1   :  { %306 = vadd.xlane.f32.xlu1 %v305_v55 }
 0x2c3   :  { %v273_v57 = vpop.f32.mrf.mxu0 }
 0x2c4   :  { %v301_v58 = vadd.f32 %v300_v56, %v273_v57 }
 0x2c6   :  { %v889_v59 = vmax.f32 %v301_v58, 0.0 }
 0x2c8   :  { %v308_v60 = vsel %vm78_vm12, %v889_v59, 0.0 }
 0x2c9   :  { %309 = vadd.xlane.f32.xlu0 %v308_v60 }
 0x334   :  { %v307_v61 = vpop.xlane.xlu1 %306 }
 0x335   :  { %v311_v0 = vmul.f32 0.03125, %v307_v61 }
 0x337   :  { %v313_v3 = vsub.f32 %v885_v54, %v311_v0 }
 0x339   :  { %v315_v5 = vmul.f32 %v313_v3, %v313_v3 }
 0x33b   :  { %v317_v6 = vsel %vm78_vm12, %v315_v5, 0.0 }
 0x33c   :  { %v310_v62 = vpop.xlane.xlu0 %309 }
 0x33d   :  { %v312_v63 = vmul.f32 0.03125, %v310_v62 }
 0x33f   :  { %v314_v1 = vsub.f32 %v889_v59, %v312_v63 }
 0x341   :  { %v316_v2 = vmul.f32 %v314_v1, %v314_v1 }
 0x343   :  { %v320_v4 = vsel %vm78_vm12, %v316_v2, 0.0  ;;  %vm535_vm12 = vcmask 261248  }
 0x344   :  { %321 = vadd.xlane.f32.xlu2 %v320_v4 }
 0x34c   :  { %318 = vadd.xlane.f32.xlu2 %v317_v6 }
 0x3b7   :  { %v322_v8 = vpop.xlane.xlu2 %321 }
 0x3b8   :  { %v324_v10 = vmul.f32 0.03125, %v322_v8 }
 0x3ba   :  { %v326_v11 = vadd.f32 1e-05, %v324_v10 }
 0x3bc   :  { %729 = vrsqrt.f32 %v326_v11  ;;  %vm343_vm6 = vweird.f32 %v326_v11 }
 0x3bf   :  { %v319_v12 = vpop.xlane.xlu2 %318 }
 0x3c0   :  { %v323_v13 = vmul.f32 0.03125, %v319_v12 }
 0x3c2   :  { %v730_v14 = vpop.eup %729  ;;  %v325_v15 = vadd.f32 1e-05, %v323_v13 }
 0x3c3   :  { %v338_v16 = vmul.f32 %v730_v14, %v326_v11  ;;  %vm344_vm5 = vweird.f32 %v730_v14 }
 0x3c4   :  { %731 = vrsqrt.f32 %v325_v15  ;;  %vm345_vm7 = vmor %vm343_vm6, %vm344_vm5  ;;  %vm333_vm9 = vweird.f32 %v325_v15 }
 0x3c5   :  { %v339_v17 = vmul.f32 %v730_v14, %v338_v16 }
 0x3c7   :  { %v340_v18 = vmul.f32 0.5, %v339_v17 }
 0x3c9   :  { %v341_v19 = vsub.f32 1.5, %v340_v18 }
 0x3ca   :  { %v732_v20 = vpop.eup %731 }
 0x3cb   :  { %v328_v21 = vmul.f32 %v732_v20, %v325_v15  ;;  %v342_v22 = vmul.f32 %v730_v14, %v341_v19  ;;  %vm334_vm8 = vweird.f32 %v732_v20 }
 0x3cc   :  { %vm335_vm10 = vmor %vm333_vm9, %vm334_vm8 }
 0x3cd   :  { %v329_v23 = vmul.f32 %v732_v20, %v328_v21  ;;  %v346_v24 = vsel %vm345_vm7, %v730_v14, %v342_v22  ;;  %vm495_vm7 = vcmask 57344  }
 0x3ce   :  { %v348_v25 = vmul.f32 %v346_v24, %v878_v30 }
 0x3cf   :  { %v330_v26 = vmul.f32 0.5, %v329_v23 }
 0x3d0   :  { %368 = vperm.xlu2 %721, %v348_v25   ;;  %v350_v27 = vmul.f32 %v348_v25, %v312_v63 }
 0x3d1   :  { %v331_v31 = vsub.f32 1.5, %v330_v26 }
 0x3d2   :  { %355 = vrot.lane.b32.xlu0 %v350_v27, %s808_s2 }
 0x3d3   :  { %v332_v32 = vmul.f32 %v732_v20, %v331_v31 }
 0x3d5   :  { %v336_v33 = vsel %vm335_vm10, %v732_v20, %v332_v32  ;;  %vm533_vm10 = vcmask 122944  }
 0x3d6   :  { %v347_v34 = vmul.f32 %v336_v33, %v869_v28 }
 0x3d8   :  { %v349_v35 = vmul.f32 %v347_v34, %v311_v0  ;;  %724 = vset.pattern.permute.xlu2 %v809_v36 }
 0x3da   :  { %363 = vperm.xlu0 %722, %v347_v34   ;;  %353 = vrot.lane.b32.xlu1 %v349_v35, %s808_s2 }
 0x42a   :  { %v369_v42 = vpop.permute.xlu2 %368 }
 0x42b   :  { %v372_v45 = vmul.f32 %v369_v42, %v889_v59 }
 0x444   :  { %v356_v37 = vpop.permute.xlu0 %355 }
 0x445   :  { %v360_v38 = vsub.f32 %v878_v30, %v356_v37 }
 0x447   :  { %380 = vperm.xlu1 %723, %v360_v38  }
 0x44c   :  { %v354_v39 = vpop.permute.xlu1 %353  ;;  %v364_v43 = vpop.permute.xlu0 %363 }
 0x44d   :  { %v359_v40 = vsub.f32 %v869_v28, %v354_v39  ;;  %v371_v46 = vmul.f32 %v364_v43, %v885_v54 }
 0x44f   :  { %375 = vperm.xlu2 %724, %v359_v40   ;;  %725 = vset.pattern.permute.xlu1 %v806_v29 }
 0x450   :  { %389 = vperm.xlu1 %725, %v41_v41  }
 0x4a9   :  { %v376_v44 = vpop.permute.xlu2 %375 }
 0x4aa   :  { %v383_v47 = vadd.f32 %v376_v44, %v371_v46 }
 0x4b9   :  { %v381_v30 = vpop.permute.xlu1 %380 }
 0x4ba   :  { %v384_v48 = vadd.f32 %v381_v30, %v372_v45 }
 0x4bc   :  { %733 = vtanh.f32 %v384_v48 }
 0x4bd   :  { %735 = vtanh.f32 %v383_v47 }
 0x4c2   :  { %v734_v28 = vpop.eup %733  ;;  %v390_v51 = vpop.permute.xlu1 %389 }
 0x4c3   :  { %410 = vmatpush.msrb.mxu3 %v734_v28  ;;  %v736_v50 = vpop.eup %735 }
 0x4c5   :  { %411 = vmatpush.msrb.mxu3 %v736_v50 }
 0x4c6   :  { %708 = vmatmul.msk.f32.vlgmr.msrb.gmra.mxu3 %vm392_vm11, %v40_v49 }
 0x549   :  { %v413_v52 = vpop.f32.mrf.mxu3 }
 0x54a   :  { %v414_v53 = vadd.f32 %v413_v52, %v390_v51 }
 0x54c   :  { %v536_v55 = vsel %vm535_vm12, %v414_v53, -inf  ;;  %v416_v59 = vsel %vm392_vm11, %v414_v53, -inf }
 0x54d   :  { %537 = vmax.xlane.f32.xlu0 %v536_v55 }
 0x5c0   :  { %v538_v54 = vpop.xlane.xlu0 %537 }
 0x5c1   :  { %v539_v56 = vsub.f32 %v414_v53, %v538_v54 }
 0x5c3   :  { %v540_v57 = vmul.f32 1.442695, %v539_v56 }
 0x5c5   :  { %737 = vpow2.f32 %v540_v57 }
 0x5cb   :  { %v738_v58 = vpop.eup %737 }
 0x5cc   :  { %543 = vrot.lane.b32.xlu2 %v738_v58, %s804_s27 }
 0x5f5   :  { %417 = vmax.xlane.f32.xlu2 %v416_v59 }
 0x626   :  { %v544_v60 = vpop.permute.xlu2 %543 }
 0x627   :  { %v546_v61 = vsel %vm392_vm11, %v544_v60, 0.0 }
 0x628   :  { %547 = vadd.xlane.f32.xlu1 %v546_v61 }
 0x668   :  { %v418_v62 = vpop.xlane.xlu2 %417 }
 0x669   :  { %v419_v63 = vsub.f32 %v414_v53, %v418_v62 }
 0x66b   :  { %v420_v0 = vmul.f32 1.442695, %v419_v63 }
 0x66d   :  { %739 = vpow2.f32 %v420_v0 }
 0x673   :  { %v740_v1 = vpop.eup %739 }
 0x674   :  { %v422_v2 = vsel %vm392_vm11, %v740_v1, 0.0 }
 0x675   :  { %423 = vadd.xlane.f32.xlu1 %v422_v2 }
 0x69b   :  { %v548_v3 = vpop.xlane.xlu1 %547 }
 0x69c   :  { %741 = vrcp.f32 %v548_v3  ;;  %v560_v7 = vand.u32 2147483648, %v548_v3  ;;  %v558_v10 = vand.u32 2147483647, %v548_v3  ;;  %vm554_vm14 = vweird.f32 %v548_v3 }
 0x69e   :  { %v561_v12 = vor.u32 1.1754944e-38, %v560_v7  ;;  %vm559_vm0 = vcmp.eq.f32.partialorder %v558_v10, 8.507059e+37 }
 0x6a2   :  { %v742_v4 = vpop.eup %741 }
 0x6a3   :  { %v550_v5 = vmul.f32 %v742_v4, %v548_v3  ;;  %vm555_vm13 = vweird.f32 %v742_v4 }
 0x6a4   :  { %vm556_vm15 = vmor %vm554_vm14, %vm555_vm13 }
 0x6a5   :  { %v551_v6 = vsub.f32 1.0, %v550_v5 }
 0x6a7   :  { %v552_v8 = vmul.f32 %v742_v4, %v551_v6 }
 0x6a9   :  { %v553_v11 = vadd.f32 %v742_v4, %v552_v8 }
 0x6ab   :  { %v557_v13 = vsel %vm556_vm15, %v742_v4, %v553_v11 }
 0x6ac   :  { %v562_v14 = vsel %vm559_vm0, %v561_v12, %v557_v13 }
 0x6ad   :  { %v563_v15 = vmul.f32 %v738_v58, %v562_v14 }
 0x6af   :  { %v564_v16 = vmul.f32 %v563_v15, %v848_v9 }
 0x6b1   :  { %566 = vrot.lane.b32.xlu0 %v564_v16, %s804_s27 }
 0x6e8   :  { %v424_v17 = vpop.xlane.xlu1 %423 }
 0x6e9   :  { %743 = vrcp.f32 %v424_v17  ;;  %v436_v21 = vand.u32 2147483648, %v424_v17  ;;  %v434_v23 = vand.u32 2147483647, %v424_v17  ;;  %vm430_vm2 = vweird.f32 %v424_v17 }
 0x6eb   :  { %v437_v25 = vor.u32 1.1754944e-38, %v436_v21  ;;  %vm435_vm4 = vcmp.eq.f32.partialorder %v434_v23, 8.507059e+37 }
 0x6ef   :  { %v744_v18 = vpop.eup %743 }
 0x6f0   :  { %v426_v19 = vmul.f32 %v744_v18, %v424_v17  ;;  %vm431_vm1 = vweird.f32 %v744_v18 }
 0x6f1   :  { %vm432_vm3 = vmor %vm430_vm2, %vm431_vm1 }
 0x6f2   :  { %v427_v20 = vsub.f32 1.0, %v426_v19 }
 0x6f4   :  { %v428_v22 = vmul.f32 %v744_v18, %v427_v20 }
 0x6f6   :  { %v429_v24 = vadd.f32 %v744_v18, %v428_v22 }
 0x6f8   :  { %v433_v26 = vsel %vm432_vm3, %v744_v18, %v429_v24 }
 0x6f9   :  { %v438_v27 = vsel %vm435_vm4, %v437_v25, %v433_v26 }
 0x6fa   :  { %v439_v31 = vmul.f32 %v740_v1, %v438_v27 }
 0x6fc   :  { %v440_v32 = vmul.f32 %v439_v31, %v848_v9 }
 0x6fe   :  { %v441_v33 = vsel %vm392_vm11, %v440_v32, 0.0 }
 0x6ff   :  { %442 = vadd.xlane.f32.xlu1 %v441_v33 }
 0x723   :  { %v567_v34 = vpop.permute.xlu0 %566 }
 0x724   :  { %v569_v35 = vsel %vm392_vm11, %v567_v34, 0.0 }
 0x725   :  { %570 = vadd.xlane.f32.xlu2 %v569_v35 }
 0x772   :  { %v443_v36 = vpop.xlane.xlu1 %442 }
 0x773   :  { %v444_v37 = vsub.f32 %v848_v9, %v443_v36  ;;  %463 = vxpose.xlu1.b32.start.end [1/1] (short) (narrow) %v443_v36, 8 }
 0x775   :  { %v445_v38 = vmul.f32 %v444_v37, %v439_v31 }
 0x777   :  { %v446_v39 = vmul.f32 %v445_v38, %v444_v37 }
 0x779   :  { %v447_v40 = vsel %vm392_vm11, %v446_v39, 0.0 }
 0x77a   :  { %448 = vadd.xlane.f32.xlu0 %v447_v40 }
 0x798   :  { %v571_v41 = vpop.xlane.xlu2 %570 }
 0x799   :  { %v572_v42 = vsub.f32 %v848_v9, %v571_v41 }
 0x79b   :  { %v573_v43 = vmul.f32 %v572_v42, %v563_v15 }
 0x79d   :  { %v574_v44 = vmul.f32 %v573_v43, %v572_v42 }
 0x79f   :  { %576 = vrot.lane.b32.xlu2 %v574_v44, %s804_s27 }
 0x7ed   :  { %v449_v45 = vpop.xlane.xlu0 %448 }
 0x7ee   :  { %v450_v46 = vmax.f32 %v449_v45, 1e-12 }
 0x7f0   :  { %745 = vrsqrt.f32 %v450_v46  ;;  %vm458_vm5 = vcmp.eq.f32.partialorder %v450_v46, inf  ;;  %v461_v9 = vand.u32 2147483648, %v450_v46  ;;  %vm460_vm6 = vcmp.eq.f32.partialorder %v450_v46, 0.0 }
 0x7f6   :  { %v746_v30 = vpop.eup %745 }
 0x7f7   :  { %v452_v47 = vmul.f32 %v746_v30, %v450_v46 }
 0x7f9   :  { %v577_v48 = vpop.permute.xlu2 %576  ;;  %v453_v28 = vmul.f32 %v746_v30, %v452_v47 }
 0x7fa   :  { %v579_v49 = vsel %vm392_vm11, %v577_v48, 0.0 }
 0x7fb   :  { %580 = vadd.xlane.f32.xlu2 %v579_v49  ;;  %v454_v50 = vmul.f32 0.5, %v453_v28 }
 0x7fd   :  { %v455_v51 = vsub.f32 1.5, %v454_v50 }
 0x7ff   :  { %v456_v52 = vmul.f32 %v746_v30, %v455_v51 }
 0x801   :  { %v457_v53 = vmul.f32 %v456_v52, %v450_v46 }
 0x803   :  { %v459_v55 = vsel %vm458_vm5, %v450_v46, %v457_v53 }
 0x804   :  { %v462_v54 = vsel %vm460_vm6, %v461_v9, %v459_v55 }
 0x805   :  { %497 = vxpose.xlu0.b32.start.end [1/1] (short) (narrow) %v462_v54, 8 }
 0x80d   :  { %595 = vxpose.xlu0.b32.start.end [1/1] (short) (narrow) %v571_v41, 8 }
 0x817   :  { %v479_v56 = vpop.trf.xlu1 }
 0x818   :  { %496 = vst.msk [vmem:[#allocation5] sm:$0x1] %vm495_vm7, %v479_v56 }
 0x86e   :  { %v581_v57 = vpop.xlane.xlu2 %580 }
 0x86f   :  { %v582_v58 = vmax.f32 %v581_v57, 1e-12 }
 0x871   :  { %747 = vrsqrt.f32 %v582_v58  ;;  %vm590_vm8 = vcmp.eq.f32.partialorder %v582_v58, inf  ;;  %v593_v2 = vand.u32 2147483648, %v582_v58  ;;  %vm592_vm9 = vcmp.eq.f32.partialorder %v582_v58, 0.0 }
 0x874   :  { %726 = vset.pattern.permute.xlu0 %v806_v29 }
 0x877   :  { %v748_v59 = vpop.eup %747 }
 0x878   :  { %v584_v60 = vmul.f32 %v748_v59, %v582_v58 }
 0x87a   :  { %v585_v61 = vmul.f32 %v748_v59, %v584_v60 }
 0x87c   :  { %v586_v62 = vmul.f32 0.5, %v585_v61 }
 0x87e   :  { %v587_v63 = vsub.f32 1.5, %v586_v62 }
 0x880   :  { %v588_v0 = vmul.f32 %v748_v59, %v587_v63 }
 0x882   :  { %v589_v1 = vmul.f32 %v588_v0, %v582_v58 }
 0x884   :  { %v591_v3 = vsel %vm590_vm8, %v582_v58, %v589_v1 }
 0x885   :  { %v594_v4 = vsel %vm592_vm9, %v593_v2, %v591_v3 }
 0x886   :  { %628 = vxpose.xlu1.b32.start.end [1/1] (short) (narrow) %v594_v4, 8 }
 0x8a9   :  { %v513_v5 = vpop.trf.xlu0 }
 0x8aa   :  { %530 = vrot.lane.b32.xlu2 %v513_v5, %s810_s4 }
 0x8b1   :  { %v611_v6 = vpop.trf.xlu0 }
 0x8b2   :  { %627 = vst.msk [vmem:[#allocation5 + $0x1] sm:$0x1] %vm495_vm7, %v611_v6 }
 0x904   :  { %v531_v7 = vpop.permute.xlu2 %530 }
 0x905   :  { %534 = vst.msk [vmem:[#allocation5] sm:$0x1] %vm533_vm10, %v531_v7 }
 0x92a   :  { %v644_v29 = vpop.trf.xlu1 }
 0x92b   :  { %661 = vrot.lane.b32.xlu1 %v644_v29, %s810_s4 }
 0x99d   :  { %v662_v8 = vpop.permute.xlu1 %661 }
 0x99e   :  { %664 = vst.msk [vmem:[#allocation5 + $0x1] sm:$0x1] %vm533_vm10, %v662_v8 }
 0x99f   :  { %675 = dma.vmem_to_hbm [thread:$0]  %s671_s10, 32, %s673_s13, [#allocation4]  }
 0x9a0   :  { %799 = dma.done.wait [#allocation4], 32  }
 0x9a1   :  { %800 = vsyncadd [#allocation4], 4294967264 }
 0x9a2   :  { %680 = vsyncpa [#allocation3], 1 }
 0x9a3   :  { %681 = vsyncpa [#allocation4], 1 }

</bundles_post_ra>
